<compile_context>
chip_gen: v7x
topology: tpu7x:2x2x1
jax: 0.10.0
libtpu: 0.0.40
codegen_flags: <defaults>
</compile_context>

<pallas_src>
import functools

import jax
import jax.numpy as jnp
from jax import lax
from jax.experimental import pallas as pl
from jax.experimental.pallas import tpu as pltpu

_NC = 10          # per-face raster coefficients: a0,b0,c0,a1,b1,c1,az,bz,cz,light
_NEAR = 0.1
_FAR = 100.0
_AMBIENT = 0.5
_DIRECTIONAL = 0.5


# --------------------------------------------------------------------------------------
# Kernel 1: per-face projection + lighting + barycentric-plane setup (faces on lanes)
# --------------------------------------------------------------------------------------
def _face_setup_kernel(fw_ref, tex_ref, r_ref, k_ref, t_ref, o_ref, *, orig_size, near):
    b = pl.program_id(0)
    eps = 1e-9
    fw = fw_ref[0]                                   # (9, F): x0,y0,z0,x1,y1,z1,x2,y2,z2

    x0 = fw[0:1, :]; y0 = fw[1:2, :]; z0 = fw[2:3, :]
    x1 = fw[3:4, :]; y1 = fw[4:5, :]; z1 = fw[5:6, :]
    x2 = fw[6:7, :]; y2 = fw[7:8, :]; z2 = fw[8:9, :]

    # flat lighting from the world-space face normal, light direction [0, 0, 1]
    e1x = x1 - x0; e1y = y1 - y0; e1z = z1 - z0
    e2x = x2 - x0; e2y = y2 - y0; e2z = z2 - z0
    nx = e1y * e2z - e1z * e2y
    ny = e1z * e2x - e1x * e2z
    nz = e1x * e2y - e1y * e2x
    cos_l = jnp.maximum(nz * lax.rsqrt(nx * nx + ny * ny + nz * nz + 1e-12), 0.0)
    light = (_AMBIENT + _DIRECTIONAL * cos_l) * tex_ref[0]     # textures are all ones

    # projection: v_cam = v @ R^T + t -> perspective divide -> K -> nr NDC in [-1, 1]
    def project(x, y, z):
        xc = x * r_ref[b, 0] + y * r_ref[b, 1] + z * r_ref[b, 2] + t_ref[b, 0]
        yc = x * r_ref[b, 3] + y * r_ref[b, 4] + z * r_ref[b, 5] + t_ref[b, 1]
        zc = x * r_ref[b, 6] + y * r_ref[b, 7] + z * r_ref[b, 8] + t_ref[b, 2]
        inv_zc = 1.0 / (zc + eps)
        xp = xc * inv_zc
        yp = yc * inv_zc
        u = xp * k_ref[b, 0] + yp * k_ref[b, 1] + k_ref[b, 2]
        v = xp * k_ref[b, 3] + yp * k_ref[b, 4] + k_ref[b, 5]
        v = orig_size - v
        u = 2.0 * (u - orig_size / 2.0) / orig_size
        v = 2.0 * (v - orig_size / 2.0) / orig_size
        return u, v, zc

    u0, v0, zc0 = project(x0, y0, z0)
    u1, v1, zc1 = project(x1, y1, z1)
    u2, v2, zc2 = project(x2, y2, z2)

    # barycentric coords are affine in pixel coords: w0 = a0 + b0*px + c0*py, etc.
    area = (u1 - u0) * (v2 - v0) - (v1 - v0) * (u2 - u0)
    valid = (jnp.abs(area) > 1e-12) & (zc0 > near) & (zc1 > near) & (zc2 > near)
    inv_a = jnp.where(valid, 1.0 / jnp.where(valid, area, 1.0), 0.0)
    a0 = (u1 * v2 - v1 * u2) * inv_a
    b0 = (v1 - v2) * inv_a
    c0 = (u2 - u1) * inv_a
    a1 = (u2 * v0 - v2 * u0) * inv_a
    b1 = (v2 - v0) * inv_a
    c1 = (u0 - u2) * inv_a
    # perspective-correct 1/z is also affine in pixel coords
    iz0 = 1.0 / jnp.maximum(zc0, 1e-8)
    iz1 = 1.0 / jnp.maximum(zc1, 1e-8)
    iz2 = 1.0 / jnp.maximum(zc2, 1e-8)
    d0 = iz0 - iz2
    d1 = iz1 - iz2
    az = iz2 + a0 * d0 + a1 * d1
    bz = b0 * d0 + b1 * d1
    cz = c0 * d0 + c1 * d1
    # invalid (degenerate / behind near plane) faces: force w0 < 0 so they never rasterize
    a0 = jnp.where(valid, a0, -1.0)
    b0 = jnp.where(valid, b0, 0.0)
    c0 = jnp.where(valid, c0, 0.0)

    o_ref[0, 0:1, :] = a0
    o_ref[0, 1:2, :] = b0
    o_ref[0, 2:3, :] = c0
    o_ref[0, 3:4, :] = a1
    o_ref[0, 4:5, :] = b1
    o_ref[0, 5:6, :] = c1
    o_ref[0, 6:7, :] = az
    o_ref[0, 7:8, :] = bz
    o_ref[0, 8:9, :] = cz
    o_ref[0, 9:10, :] = light


def face_setup(face_world_lane, tex, cam_K, cam_R, cam_ts, img_wh):
    B, _, F = face_world_lane.shape
    r_flat = cam_R.reshape(B, 9).astype(jnp.float32)
    k_flat = cam_K.reshape(B, 9).astype(jnp.float32)
    t_flat = cam_ts.reshape(B, 3).astype(jnp.float32)
    kern = functools.partial(_face_setup_kernel, orig_size=float(img_wh), near=_NEAR)
    return pl.pallas_call(
        kern,
        out_shape=jax.ShapeDtypeStruct((B, _NC, F), jnp.float32),
        grid=(B,),
        in_specs=[
            pl.BlockSpec((1, 9, F), lambda b: (b, 0, 0)),
            pl.BlockSpec((1, 1, F), lambda b: (b, 0, 0)),
            pl.BlockSpec(memory_space=pltpu.MemorySpace.SMEM),
            pl.BlockSpec(memory_space=pltpu.MemorySpace.SMEM),
            pl.BlockSpec(memory_space=pltpu.MemorySpace.SMEM),
        ],
        out_specs=pl.BlockSpec((1, _NC, F), lambda b: (b, 0, 0)),
        compiler_params=pltpu.CompilerParams(dimension_semantics=("parallel",)),
    )(face_world_lane.astype(jnp.float32), tex.astype(jnp.float32), r_flat, k_flat, t_flat)


# --------------------------------------------------------------------------------------
# Kernel 2: z-buffered rasterization on a lane-dense pixel tile, register-carried buffers
# --------------------------------------------------------------------------------------
def _raster_kernel(coef_ref, rgb_ref, depth_ref, *, num_faces, width, height, near, far):
    b = pl.program_id(0)
    sub, lanes = depth_ref.shape[1], depth_ref.shape[2]

    # flat pixel index p = s*128 + l; x = p % W, y = p // W (float math, exact for p < 2^24)
    lin = (lax.broadcasted_iota(jnp.float32, (sub, lanes), 0) * float(lanes)
           + lax.broadcasted_iota(jnp.float32, (sub, lanes), 1))
    yi = jnp.floor(lin / float(width))
    xi = lin - float(width) * yi
    px = (2.0 * xi + 1.0 - width) / width
    py = (2.0 * yi + 1.0 - height) / height

    depth0 = jnp.full((sub, lanes), far, jnp.float32)   # background depth = far (nr default)
    color0 = jnp.zeros((sub, lanes), jnp.float32)       # background color = 0

    def body(f, carry):
        depth, color = carry
        base = f * _NC
        a0 = coef_ref[b, base + 0]
        b0 = coef_ref[b, base + 1]
        c0 = coef_ref[b, base + 2]
        a1 = coef_ref[b, base + 3]
        b1 = coef_ref[b, base + 4]
        c1 = coef_ref[b, base + 5]
        az = coef_ref[b, base + 6]
        bz = coef_ref[b, base + 7]
        cz = coef_ref[b, base + 8]
        light = coef_ref[b, base + 9]

        w0 = a0 + b0 * px + c0 * py
        w1 = a1 + b1 * px + c1 * py
        w2 = 1.0 - w0 - w1
        inside = (w0 >= 0.0) & (w1 >= 0.0) & (w2 >= 0.0)
        inv_z = az + bz * px + cz * py
        zf = pl.reciprocal(jnp.maximum(inv_z, 1e-8), approx=True)
        vis = inside & (zf > near) & (zf < depth)
        depth = jnp.where(vis, zf, depth)
        color = jnp.where(vis, light, color)
        return depth, color

    depth, color = lax.fori_loop(0, num_faces, body, (depth0, color0), unroll=True)

    depth_ref[0] = depth
    rgb_ref[0] = jnp.broadcast_to(color[None], (3, sub, lanes))


def rasterize(coef_flat, img_wh, num_faces):
    B = coef_flat.shape[0]
    hw = img_wh * img_wh
    assert hw % 128 == 0, "image must flatten to whole 128-lane rows"
    sub = hw // 128
    kern = functools.partial(_raster_kernel, num_faces=num_faces,
                             width=float(img_wh), height=float(img_wh),
                             near=_NEAR, far=_FAR)
    return pl.pallas_call(
        kern,
        out_shape=(
            jax.ShapeDtypeStruct((B, 3, sub, 128), jnp.float32),
            jax.ShapeDtypeStruct((B, sub, 128), jnp.float32),
        ),
        grid=(B,),
        in_specs=[pl.BlockSpec(memory_space=pltpu.MemorySpace.SMEM)],
        out_specs=(
            pl.BlockSpec((1, 3, sub, 128), lambda b: (b, 0, 0, 0)),
            pl.BlockSpec((1, sub, 128), lambda b: (b, 0, 0)),
        ),
        compiler_params=pltpu.CompilerParams(dimension_semantics=("parallel",)),
    )(coef_flat)


# --------------------------------------------------------------------------------------
# Module wrapper mirroring NMRRenderer(rend_parts_seg=False)
# --------------------------------------------------------------------------------------
class NMRRendererPallas:
    def __init__(self, batch_size, cam_K, cam_R, img_wh=32, rend_parts_seg=False,
                 num_vertices=64, num_faces=48):
        # deterministic synthetic mesh topology (stands in for the SMPL face buffer)
        idx = jnp.arange(num_faces)
        faces = jnp.stack(
            [idx % num_vertices, (idx * 7 + 1) % num_vertices, (idx * 13 + 2) % num_vertices],
            axis=-1).astype(jnp.int32)
        self.faces = jnp.broadcast_to(faces[None], (batch_size, num_faces, 3))
        # texture buffer: ones, same as the rend_parts_seg=False branch of __init__
        self.textures = jnp.ones((batch_size, num_faces, 2, 2, 2, 3), jnp.float32)
        if cam_K.ndim != 3:
            cam_K = jnp.broadcast_to(cam_K[None], (batch_size, 3, 3))
            cam_R = jnp.broadcast_to(cam_R[None], (batch_size, 3, 3))
        self.cam_K = cam_K.astype(jnp.float32)
        self.cam_R = cam_R.astype(jnp.float32)
        self.img_wh = int(img_wh)
        self.rend_parts_seg = rend_parts_seg  # TODO(synk): parts-seg path needs cube_parts table

    def __call__(self, vertices, cam_ts):
        if cam_ts.ndim == 2:
            cam_ts = cam_ts[:, None, :]
        B = vertices.shape[0]
        F = self.faces.shape[1]

        # glue: gather per-face world vertices and lay them out lane-major (B, 9, F)
        faces0 = self.faces[0]
        fw = vertices.astype(jnp.float32)[:, faces0, :]            # (B, F, 3, 3)
        fw_lane = fw.reshape(B, F, 9).transpose(0, 2, 1)           # (B, 9, F)
        tex = self.textures[:, :, 0, 0, 0, 0][:, None, :]          # (B, 1, F) all-ones texel

        # Pallas kernel 1: projection + lighting + raster-plane coefficients (F on lanes)
        coef = face_setup(fw_lane, tex, self.cam_K, self.cam_R, cam_ts, self.img_wh)
        coef_flat = coef.transpose(0, 2, 1).reshape(B, F * _NC)    # per-face contiguous

        # Pallas kernel 2: z-buffer rasterization on lane-dense pixel tiles
        rgb_flat, depth_flat = rasterize(coef_flat, self.img_wh, F)
        rend_image = rgb_flat.reshape(B, 3, self.img_wh, self.img_wh)
        depth = depth_flat.reshape(B, self.img_wh, self.img_wh)
        return rend_image, depth


if __name__ == "__main__":
    B, N, img_wh = 2, 64, 32
    key = jax.random.PRNGKey(0)
    kv, kt = jax.random.split(key)
    vertices = 0.5 * jax.random.normal(kv, (B, N, 3), dtype=jnp.float32)
    cam_ts = jnp.concatenate(
        [0.1 * jax.random.normal(kt, (B, 1, 2), dtype=jnp.float32),
         jnp.full((B, 1, 1), 5.0, dtype=jnp.float32)], axis=-1)

    f = float(img_wh)
    cam_K = jnp.array([[f, 0.0, img_wh / 2.0],
                       [0.0, f, img_wh / 2.0],
                       [0.0, 0.0, 1.0]], dtype=jnp.float32)
    cam_R = jnp.eye(3, dtype=jnp.float32)

    renderer = NMRRendererPallas(B, cam_K, cam_R, img_wh=img_wh, rend_parts_seg=False)
    rend_image, depth = renderer(vertices, cam_ts)
    jax.block_until_ready((rend_image, depth))
    assert rend_image.shape == (B, 3, img_wh, img_wh)
    assert depth.shape == (B, img_wh, img_wh)
    print("KERNEL_OK")
</pallas_src>

<mosaic_0001>
module attributes {stable_mosaic.version = 11 : i64} {
  func.func @_face_setup_kernel(%arg0: i32, %arg1: memref<1x9x48xf32, #tpu.memory_space<vmem>>, %arg2: memref<1x1x48xf32, #tpu.memory_space<vmem>>, %arg3: memref<2x9xf32, #tpu.memory_space<smem>>, %arg4: memref<2x9xf32, #tpu.memory_space<smem>>, %arg5: memref<2x3xf32, #tpu.memory_space<smem>>, %arg6: memref<1x10x48xf32, #tpu.memory_space<vmem>>) attributes {dimension_semantics = [#tpu.dimension_semantics<parallel>], iteration_bounds = array<i64: 2>, scalar_prefetch = 0 : i64, scratch_operands = 0 : i64, tpu.core_type = #tpu.core_type<tc>, window_params = [{transform_indices = @transform_0, window_bounds = array<i64: 1, 9, 48>}, {transform_indices = @transform_1, window_bounds = array<i64: 1, 1, 48>}, {transform_indices = @transform_2, window_bounds = array<i64: 2, 9>}, {transform_indices = @transform_3, window_bounds = array<i64: 2, 9>}, {transform_indices = @transform_4, window_bounds = array<i64: 2, 3>}, {transform_indices = @transform_5, window_bounds = array<i64: 1, 10, 48>}]} {
    %c0 = arith.constant 0 : index
    %c0_0 = arith.constant 0 : index
    %c0_1 = arith.constant 0 : index
    %0 = vector.load %arg1[%c0, %c0_0, %c0_1] : memref<1x9x48xf32, #tpu.memory_space<vmem>>, vector<1x9x48xf32>
    %1 = vector.shape_cast %0 : vector<1x9x48xf32> to vector<9x48xf32>
    %2 = vector.extract_strided_slice %1 {offsets = [0, 0], sizes = [1, 48], strides = [1, 1]} : vector<9x48xf32> to vector<1x48xf32>
    %3 = vector.extract_strided_slice %1 {offsets = [1, 0], sizes = [1, 48], strides = [1, 1]} : vector<9x48xf32> to vector<1x48xf32>
    %4 = vector.extract_strided_slice %1 {offsets = [2, 0], sizes = [1, 48], strides = [1, 1]} : vector<9x48xf32> to vector<1x48xf32>
    %5 = vector.extract_strided_slice %1 {offsets = [3, 0], sizes = [1, 48], strides = [1, 1]} : vector<9x48xf32> to vector<1x48xf32>
    %6 = vector.extract_strided_slice %1 {offsets = [4, 0], sizes = [1, 48], strides = [1, 1]} : vector<9x48xf32> to vector<1x48xf32>
    %7 = vector.extract_strided_slice %1 {offsets = [5, 0], sizes = [1, 48], strides = [1, 1]} : vector<9x48xf32> to vector<1x48xf32>
    %8 = vector.extract_strided_slice %1 {offsets = [6, 0], sizes = [1, 48], strides = [1, 1]} : vector<9x48xf32> to vector<1x48xf32>
    %9 = vector.extract_strided_slice %1 {offsets = [7, 0], sizes = [1, 48], strides = [1, 1]} : vector<9x48xf32> to vector<1x48xf32>
    %10 = vector.extract_strided_slice %1 {offsets = [8, 0], sizes = [1, 48], strides = [1, 1]} : vector<9x48xf32> to vector<1x48xf32>
    %11 = arith.subf %5, %2 : vector<1x48xf32>
    %12 = arith.subf %6, %3 : vector<1x48xf32>
    %13 = arith.subf %7, %4 : vector<1x48xf32>
    %14 = arith.subf %8, %2 : vector<1x48xf32>
    %15 = arith.subf %9, %3 : vector<1x48xf32>
    %16 = arith.subf %10, %4 : vector<1x48xf32>
    %17 = arith.mulf %12, %16 : vector<1x48xf32>
    %18 = arith.mulf %13, %15 : vector<1x48xf32>
    %19 = arith.subf %17, %18 : vector<1x48xf32>
    %20 = arith.mulf %13, %14 : vector<1x48xf32>
    %21 = arith.mulf %11, %16 : vector<1x48xf32>
    %22 = arith.subf %20, %21 : vector<1x48xf32>
    %23 = arith.mulf %11, %15 : vector<1x48xf32>
    %24 = arith.mulf %12, %14 : vector<1x48xf32>
    %25 = arith.subf %23, %24 : vector<1x48xf32>
    %26 = arith.mulf %19, %19 : vector<1x48xf32>
    %27 = arith.mulf %22, %22 : vector<1x48xf32>
    %28 = arith.addf %26, %27 : vector<1x48xf32>
    %29 = arith.mulf %25, %25 : vector<1x48xf32>
    %30 = arith.addf %28, %29 : vector<1x48xf32>
    %cst = arith.constant 9.99999996E-13 : f32
    %31 = vector.broadcast %cst : f32 to vector<1x48xf32>
    %32 = arith.addf %30, %31 : vector<1x48xf32>
    %33 = math.rsqrt %32 : vector<1x48xf32>
    %34 = arith.mulf %25, %33 : vector<1x48xf32>
    %cst_2 = arith.constant 0.000000e+00 : f32
    %35 = vector.broadcast %cst_2 : f32 to vector<1x48xf32>
    %36 = arith.maximumf %34, %35 : vector<1x48xf32>
    %cst_3 = arith.constant 5.000000e-01 : f32
    %37 = vector.broadcast %cst_3 : f32 to vector<1x48xf32>
    %38 = arith.mulf %37, %36 : vector<1x48xf32>
    %cst_4 = arith.constant 5.000000e-01 : f32
    %39 = vector.broadcast %cst_4 : f32 to vector<1x48xf32>
    %40 = arith.addf %39, %38 : vector<1x48xf32>
    %c0_5 = arith.constant 0 : index
    %c0_6 = arith.constant 0 : index
    %c0_7 = arith.constant 0 : index
    %41 = vector.load %arg2[%c0_5, %c0_6, %c0_7] : memref<1x1x48xf32, #tpu.memory_space<vmem>>, vector<1x1x48xf32>
    %42 = vector.shape_cast %41 : vector<1x1x48xf32> to vector<1x48xf32>
    %43 = arith.mulf %40, %42 : vector<1x48xf32>
    %44 = arith.index_cast %arg0 : i32 to index
    %c0_8 = arith.constant 0 : index
    %45 = memref.load %arg3[%44, %c0_8] : memref<2x9xf32, #tpu.memory_space<smem>>
    %46 = vector.broadcast %45 : f32 to vector<1x48xf32>
    %47 = arith.mulf %2, %46 : vector<1x48xf32>
    %48 = arith.index_cast %arg0 : i32 to index
    %c1 = arith.constant 1 : index
    %49 = memref.load %arg3[%48, %c1] : memref<2x9xf32, #tpu.memory_space<smem>>
    %50 = vector.broadcast %49 : f32 to vector<1x48xf32>
    %51 = arith.mulf %3, %50 : vector<1x48xf32>
    %52 = arith.addf %47, %51 : vector<1x48xf32>
    %53 = arith.index_cast %arg0 : i32 to index
    %c2 = arith.constant 2 : index
    %54 = memref.load %arg3[%53, %c2] : memref<2x9xf32, #tpu.memory_space<smem>>
    %55 = vector.broadcast %54 : f32 to vector<1x48xf32>
    %56 = arith.mulf %4, %55 : vector<1x48xf32>
    %57 = arith.addf %52, %56 : vector<1x48xf32>
    %58 = arith.index_cast %arg0 : i32 to index
    %c0_9 = arith.constant 0 : index
    %59 = memref.load %arg5[%58, %c0_9] : memref<2x3xf32, #tpu.memory_space<smem>>
    %60 = vector.broadcast %59 : f32 to vector<1x48xf32>
    %61 = arith.addf %57, %60 : vector<1x48xf32>
    %62 = arith.index_cast %arg0 : i32 to index
    %c3 = arith.constant 3 : index
    %63 = memref.load %arg3[%62, %c3] : memref<2x9xf32, #tpu.memory_space<smem>>
    %64 = vector.broadcast %63 : f32 to vector<1x48xf32>
    %65 = arith.mulf %2, %64 : vector<1x48xf32>
    %66 = arith.index_cast %arg0 : i32 to index
    %c4 = arith.constant 4 : index
    %67 = memref.load %arg3[%66, %c4] : memref<2x9xf32, #tpu.memory_space<smem>>
    %68 = vector.broadcast %67 : f32 to vector<1x48xf32>
    %69 = arith.mulf %3, %68 : vector<1x48xf32>
    %70 = arith.addf %65, %69 : vector<1x48xf32>
    %71 = arith.index_cast %arg0 : i32 to index
    %c5 = arith.constant 5 : index
    %72 = memref.load %arg3[%71, %c5] : memref<2x9xf32, #tpu.memory_space<smem>>
    %73 = vector.broadcast %72 : f32 to vector<1x48xf32>
    %74 = arith.mulf %4, %73 : vector<1x48xf32>
    %75 = arith.addf %70, %74 : vector<1x48xf32>
    %76 = arith.index_cast %arg0 : i32 to index
    %c1_10 = arith.constant 1 : index
    %77 = memref.load %arg5[%76, %c1_10] : memref<2x3xf32, #tpu.memory_space<smem>>
    %78 = vector.broadcast %77 : f32 to vector<1x48xf32>
    %79 = arith.addf %75, %78 : vector<1x48xf32>
    %80 = arith.index_cast %arg0 : i32 to index
    %c6 = arith.constant 6 : index
    %81 = memref.load %arg3[%80, %c6] : memref<2x9xf32, #tpu.memory_space<smem>>
    %82 = vector.broadcast %81 : f32 to vector<1x48xf32>
    %83 = arith.mulf %2, %82 : vector<1x48xf32>
    %84 = arith.index_cast %arg0 : i32 to index
    %c7 = arith.constant 7 : index
    %85 = memref.load %arg3[%84, %c7] : memref<2x9xf32, #tpu.memory_space<smem>>
    %86 = vector.broadcast %85 : f32 to vector<1x48xf32>
    %87 = arith.mulf %3, %86 : vector<1x48xf32>
    %88 = arith.addf %83, %87 : vector<1x48xf32>
    %89 = arith.index_cast %arg0 : i32 to index
    %c8 = arith.constant 8 : index
    %90 = memref.load %arg3[%89, %c8] : memref<2x9xf32, #tpu.memory_space<smem>>
    %91 = vector.broadcast %90 : f32 to vector<1x48xf32>
    %92 = arith.mulf %4, %91 : vector<1x48xf32>
    %93 = arith.addf %88, %92 : vector<1x48xf32>
    %94 = arith.index_cast %arg0 : i32 to index
    %c2_11 = arith.constant 2 : index
    %95 = memref.load %arg5[%94, %c2_11] : memref<2x3xf32, #tpu.memory_space<smem>>
    %96 = vector.broadcast %95 : f32 to vector<1x48xf32>
    %97 = arith.addf %93, %96 : vector<1x48xf32>
    %cst_12 = arith.constant 9.99999971E-10 : f32
    %98 = vector.broadcast %cst_12 : f32 to vector<1x48xf32>
    %99 = arith.addf %97, %98 : vector<1x48xf32>
    %cst_13 = arith.constant 1.000000e+00 : f32
    %100 = vector.broadcast %cst_13 : f32 to vector<1x48xf32>
    %101 = arith.divf %100, %99 : vector<1x48xf32>
    %102 = arith.mulf %61, %101 : vector<1x48xf32>
    %103 = arith.mulf %79, %101 : vector<1x48xf32>
    %104 = arith.index_cast %arg0 : i32 to index
    %c0_14 = arith.constant 0 : index
    %105 = memref.load %arg4[%104, %c0_14] : memref<2x9xf32, #tpu.memory_space<smem>>
    %106 = vector.broadcast %105 : f32 to vector<1x48xf32>
    %107 = arith.mulf %102, %106 : vector<1x48xf32>
    %108 = arith.index_cast %arg0 : i32 to index
    %c1_15 = arith.constant 1 : index
    %109 = memref.load %arg4[%108, %c1_15] : memref<2x9xf32, #tpu.memory_space<smem>>
    %110 = vector.broadcast %109 : f32 to vector<1x48xf32>
    %111 = arith.mulf %103, %110 : vector<1x48xf32>
    %112 = arith.addf %107, %111 : vector<1x48xf32>
    %113 = arith.index_cast %arg0 : i32 to index
    %c2_16 = arith.constant 2 : index
    %114 = memref.load %arg4[%113, %c2_16] : memref<2x9xf32, #tpu.memory_space<smem>>
    %115 = vector.broadcast %114 : f32 to vector<1x48xf32>
    %116 = arith.addf %112, %115 : vector<1x48xf32>
    %117 = arith.index_cast %arg0 : i32 to index
    %c3_17 = arith.constant 3 : index
    %118 = memref.load %arg4[%117, %c3_17] : memref<2x9xf32, #tpu.memory_space<smem>>
    %119 = vector.broadcast %118 : f32 to vector<1x48xf32>
    %120 = arith.mulf %102, %119 : vector<1x48xf32>
    %121 = arith.index_cast %arg0 : i32 to index
    %c4_18 = arith.constant 4 : index
    %122 = memref.load %arg4[%121, %c4_18] : memref<2x9xf32, #tpu.memory_space<smem>>
    %123 = vector.broadcast %122 : f32 to vector<1x48xf32>
    %124 = arith.mulf %103, %123 : vector<1x48xf32>
    %125 = arith.addf %120, %124 : vector<1x48xf32>
    %126 = arith.index_cast %arg0 : i32 to index
    %c5_19 = arith.constant 5 : index
    %127 = memref.load %arg4[%126, %c5_19] : memref<2x9xf32, #tpu.memory_space<smem>>
    %128 = vector.broadcast %127 : f32 to vector<1x48xf32>
    %129 = arith.addf %125, %128 : vector<1x48xf32>
    %cst_20 = arith.constant 3.200000e+01 : f32
    %130 = vector.broadcast %cst_20 : f32 to vector<1x48xf32>
    %131 = arith.subf %130, %129 : vector<1x48xf32>
    %cst_21 = arith.constant 1.600000e+01 : f32
    %132 = vector.broadcast %cst_21 : f32 to vector<1x48xf32>
    %133 = arith.subf %116, %132 : vector<1x48xf32>
    %cst_22 = arith.constant 2.000000e+00 : f32
    %134 = vector.broadcast %cst_22 : f32 to vector<1x48xf32>
    %135 = arith.mulf %134, %133 : vector<1x48xf32>
    %cst_23 = arith.constant 3.200000e+01 : f32
    %136 = vector.broadcast %cst_23 : f32 to vector<1x48xf32>
    %137 = arith.divf %135, %136 : vector<1x48xf32>
    %cst_24 = arith.constant 1.600000e+01 : f32
    %138 = vector.broadcast %cst_24 : f32 to vector<1x48xf32>
    %139 = arith.subf %131, %138 : vector<1x48xf32>
    %cst_25 = arith.constant 2.000000e+00 : f32
    %140 = vector.broadcast %cst_25 : f32 to vector<1x48xf32>
    %141 = arith.mulf %140, %139 : vector<1x48xf32>
    %cst_26 = arith.constant 3.200000e+01 : f32
    %142 = vector.broadcast %cst_26 : f32 to vector<1x48xf32>
    %143 = arith.divf %141, %142 : vector<1x48xf32>
    %144 = arith.index_cast %arg0 : i32 to index
    %c0_27 = arith.constant 0 : index
    %145 = memref.load %arg3[%144, %c0_27] : memref<2x9xf32, #tpu.memory_space<smem>>
    %146 = vector.broadcast %145 : f32 to vector<1x48xf32>
    %147 = arith.mulf %5, %146 : vector<1x48xf32>
    %148 = arith.index_cast %arg0 : i32 to index
    %c1_28 = arith.constant 1 : index
    %149 = memref.load %arg3[%148, %c1_28] : memref<2x9xf32, #tpu.memory_space<smem>>
    %150 = vector.broadcast %149 : f32 to vector<1x48xf32>
    %151 = arith.mulf %6, %150 : vector<1x48xf32>
    %152 = arith.addf %147, %151 : vector<1x48xf32>
    %153 = arith.index_cast %arg0 : i32 to index
    %c2_29 = arith.constant 2 : index
    %154 = memref.load %arg3[%153, %c2_29] : memref<2x9xf32, #tpu.memory_space<smem>>
    %155 = vector.broadcast %154 : f32 to vector<1x48xf32>
    %156 = arith.mulf %7, %155 : vector<1x48xf32>
    %157 = arith.addf %152, %156 : vector<1x48xf32>
    %158 = arith.index_cast %arg0 : i32 to index
    %c0_30 = arith.constant 0 : index
    %159 = memref.load %arg5[%158, %c0_30] : memref<2x3xf32, #tpu.memory_space<smem>>
    %160 = vector.broadcast %159 : f32 to vector<1x48xf32>
    %161 = arith.addf %157, %160 : vector<1x48xf32>
    %162 = arith.index_cast %arg0 : i32 to index
    %c3_31 = arith.constant 3 : index
    %163 = memref.load %arg3[%162, %c3_31] : memref<2x9xf32, #tpu.memory_space<smem>>
    %164 = vector.broadcast %163 : f32 to vector<1x48xf32>
    %165 = arith.mulf %5, %164 : vector<1x48xf32>
    %166 = arith.index_cast %arg0 : i32 to index
    %c4_32 = arith.constant 4 : index
    %167 = memref.load %arg3[%166, %c4_32] : memref<2x9xf32, #tpu.memory_space<smem>>
    %168 = vector.broadcast %167 : f32 to vector<1x48xf32>
    %169 = arith.mulf %6, %168 : vector<1x48xf32>
    %170 = arith.addf %165, %169 : vector<1x48xf32>
    %171 = arith.index_cast %arg0 : i32 to index
    %c5_33 = arith.constant 5 : index
    %172 = memref.load %arg3[%171, %c5_33] : memref<2x9xf32, #tpu.memory_space<smem>>
    %173 = vector.broadcast %172 : f32 to vector<1x48xf32>
    %174 = arith.mulf %7, %173 : vector<1x48xf32>
    %175 = arith.addf %170, %174 : vector<1x48xf32>
    %176 = arith.index_cast %arg0 : i32 to index
    %c1_34 = arith.constant 1 : index
    %177 = memref.load %arg5[%176, %c1_34] : memref<2x3xf32, #tpu.memory_space<smem>>
    %178 = vector.broadcast %177 : f32 to vector<1x48xf32>
    %179 = arith.addf %175, %178 : vector<1x48xf32>
    %180 = arith.index_cast %arg0 : i32 to index
    %c6_35 = arith.constant 6 : index
    %181 = memref.load %arg3[%180, %c6_35] : memref<2x9xf32, #tpu.memory_space<smem>>
    %182 = vector.broadcast %181 : f32 to vector<1x48xf32>
    %183 = arith.mulf %5, %182 : vector<1x48xf32>
    %184 = arith.index_cast %arg0 : i32 to index
    %c7_36 = arith.constant 7 : index
    %185 = memref.load %arg3[%184, %c7_36] : memref<2x9xf32, #tpu.memory_space<smem>>
    %186 = vector.broadcast %185 : f32 to vector<1x48xf32>
    %187 = arith.mulf %6, %186 : vector<1x48xf32>
    %188 = arith.addf %183, %187 : vector<1x48xf32>
    %189 = arith.index_cast %arg0 : i32 to index
    %c8_37 = arith.constant 8 : index
    %190 = memref.load %arg3[%189, %c8_37] : memref<2x9xf32, #tpu.memory_space<smem>>
    %191 = vector.broadcast %190 : f32 to vector<1x48xf32>
    %192 = arith.mulf %7, %191 : vector<1x48xf32>
    %193 = arith.addf %188, %192 : vector<1x48xf32>
    %194 = arith.index_cast %arg0 : i32 to index
    %c2_38 = arith.constant 2 : index
    %195 = memref.load %arg5[%194, %c2_38] : memref<2x3xf32, #tpu.memory_space<smem>>
    %196 = vector.broadcast %195 : f32 to vector<1x48xf32>
    %197 = arith.addf %193, %196 : vector<1x48xf32>
    %cst_39 = arith.constant 9.99999971E-10 : f32
    %198 = vector.broadcast %cst_39 : f32 to vector<1x48xf32>
    %199 = arith.addf %197, %198 : vector<1x48xf32>
    %cst_40 = arith.constant 1.000000e+00 : f32
    %200 = vector.broadcast %cst_40 : f32 to vector<1x48xf32>
    %201 = arith.divf %200, %199 : vector<1x48xf32>
    %202 = arith.mulf %161, %201 : vector<1x48xf32>
    %203 = arith.mulf %179, %201 : vector<1x48xf32>
    %204 = arith.index_cast %arg0 : i32 to index
    %c0_41 = arith.constant 0 : index
    %205 = memref.load %arg4[%204, %c0_41] : memref<2x9xf32, #tpu.memory_space<smem>>
    %206 = vector.broadcast %205 : f32 to vector<1x48xf32>
    %207 = arith.mulf %202, %206 : vector<1x48xf32>
    %208 = arith.index_cast %arg0 : i32 to index
    %c1_42 = arith.constant 1 : index
    %209 = memref.load %arg4[%208, %c1_42] : memref<2x9xf32, #tpu.memory_space<smem>>
    %210 = vector.broadcast %209 : f32 to vector<1x48xf32>
    %211 = arith.mulf %203, %210 : vector<1x48xf32>
    %212 = arith.addf %207, %211 : vector<1x48xf32>
    %213 = arith.index_cast %arg0 : i32 to index
    %c2_43 = arith.constant 2 : index
    %214 = memref.load %arg4[%213, %c2_43] : memref<2x9xf32, #tpu.memory_space<smem>>
    %215 = vector.broadcast %214 : f32 to vector<1x48xf32>
    %216 = arith.addf %212, %215 : vector<1x48xf32>
    %217 = arith.index_cast %arg0 : i32 to index
    %c3_44 = arith.constant 3 : index
    %218 = memref.load %arg4[%217, %c3_44] : memref<2x9xf32, #tpu.memory_space<smem>>
    %219 = vector.broadcast %218 : f32 to vector<1x48xf32>
    %220 = arith.mulf %202, %219 : vector<1x48xf32>
    %221 = arith.index_cast %arg0 : i32 to index
    %c4_45 = arith.constant 4 : index
    %222 = memref.load %arg4[%221, %c4_45] : memref<2x9xf32, #tpu.memory_space<smem>>
    %223 = vector.broadcast %222 : f32 to vector<1x48xf32>
    %224 = arith.mulf %203, %223 : vector<1x48xf32>
    %225 = arith.addf %220, %224 : vector<1x48xf32>
    %226 = arith.index_cast %arg0 : i32 to index
    %c5_46 = arith.constant 5 : index
    %227 = memref.load %arg4[%226, %c5_46] : memref<2x9xf32, #tpu.memory_space<smem>>
    %228 = vector.broadcast %227 : f32 to vector<1x48xf32>
    %229 = arith.addf %225, %228 : vector<1x48xf32>
    %cst_47 = arith.constant 3.200000e+01 : f32
    %230 = vector.broadcast %cst_47 : f32 to vector<1x48xf32>
    %231 = arith.subf %230, %229 : vector<1x48xf32>
    %cst_48 = arith.constant 1.600000e+01 : f32
    %232 = vector.broadcast %cst_48 : f32 to vector<1x48xf32>
    %233 = arith.subf %216, %232 : vector<1x48xf32>
    %cst_49 = arith.constant 2.000000e+00 : f32
    %234 = vector.broadcast %cst_49 : f32 to vector<1x48xf32>
    %235 = arith.mulf %234, %233 : vector<1x48xf32>
    %cst_50 = arith.constant 3.200000e+01 : f32
    %236 = vector.broadcast %cst_50 : f32 to vector<1x48xf32>
    %237 = arith.divf %235, %236 : vector<1x48xf32>
    %cst_51 = arith.constant 1.600000e+01 : f32
    %238 = vector.broadcast %cst_51 : f32 to vector<1x48xf32>
    %239 = arith.subf %231, %238 : vector<1x48xf32>
    %cst_52 = arith.constant 2.000000e+00 : f32
    %240 = vector.broadcast %cst_52 : f32 to vector<1x48xf32>
    %241 = arith.mulf %240, %239 : vector<1x48xf32>
    %cst_53 = arith.constant 3.200000e+01 : f32
    %242 = vector.broadcast %cst_53 : f32 to vector<1x48xf32>
    %243 = arith.divf %241, %242 : vector<1x48xf32>
    %244 = arith.index_cast %arg0 : i32 to index
    %c0_54 = arith.constant 0 : index
    %245 = memref.load %arg3[%244, %c0_54] : memref<2x9xf32, #tpu.memory_space<smem>>
    %246 = vector.broadcast %245 : f32 to vector<1x48xf32>
    %247 = arith.mulf %8, %246 : vector<1x48xf32>
    %248 = arith.index_cast %arg0 : i32 to index
    %c1_55 = arith.constant 1 : index
    %249 = memref.load %arg3[%248, %c1_55] : memref<2x9xf32, #tpu.memory_space<smem>>
    %250 = vector.broadcast %249 : f32 to vector<1x48xf32>
    %251 = arith.mulf %9, %250 : vector<1x48xf32>
    %252 = arith.addf %247, %251 : vector<1x48xf32>
    %253 = arith.index_cast %arg0 : i32 to index
    %c2_56 = arith.constant 2 : index
    %254 = memref.load %arg3[%253, %c2_56] : memref<2x9xf32, #tpu.memory_space<smem>>
    %255 = vector.broadcast %254 : f32 to vector<1x48xf32>
    %256 = arith.mulf %10, %255 : vector<1x48xf32>
    %257 = arith.addf %252, %256 : vector<1x48xf32>
    %258 = arith.index_cast %arg0 : i32 to index
    %c0_57 = arith.constant 0 : index
    %259 = memref.load %arg5[%258, %c0_57] : memref<2x3xf32, #tpu.memory_space<smem>>
    %260 = vector.broadcast %259 : f32 to vector<1x48xf32>
    %261 = arith.addf %257, %260 : vector<1x48xf32>
    %262 = arith.index_cast %arg0 : i32 to index
    %c3_58 = arith.constant 3 : index
    %263 = memref.load %arg3[%262, %c3_58] : memref<2x9xf32, #tpu.memory_space<smem>>
    %264 = vector.broadcast %263 : f32 to vector<1x48xf32>
    %265 = arith.mulf %8, %264 : vector<1x48xf32>
    %266 = arith.index_cast %arg0 : i32 to index
    %c4_59 = arith.constant 4 : index
    %267 = memref.load %arg3[%266, %c4_59] : memref<2x9xf32, #tpu.memory_space<smem>>
    %268 = vector.broadcast %267 : f32 to vector<1x48xf32>
    %269 = arith.mulf %9, %268 : vector<1x48xf32>
    %270 = arith.addf %265, %269 : vector<1x48xf32>
    %271 = arith.index_cast %arg0 : i32 to index
    %c5_60 = arith.constant 5 : index
    %272 = memref.load %arg3[%271, %c5_60] : memref<2x9xf32, #tpu.memory_space<smem>>
    %273 = vector.broadcast %272 : f32 to vector<1x48xf32>
    %274 = arith.mulf %10, %273 : vector<1x48xf32>
    %275 = arith.addf %270, %274 : vector<1x48xf32>
    %276 = arith.index_cast %arg0 : i32 to index
    %c1_61 = arith.constant 1 : index
    %277 = memref.load %arg5[%276, %c1_61] : memref<2x3xf32, #tpu.memory_space<smem>>
    %278 = vector.broadcast %277 : f32 to vector<1x48xf32>
    %279 = arith.addf %275, %278 : vector<1x48xf32>
    %280 = arith.index_cast %arg0 : i32 to index
    %c6_62 = arith.constant 6 : index
    %281 = memref.load %arg3[%280, %c6_62] : memref<2x9xf32, #tpu.memory_space<smem>>
    %282 = vector.broadcast %281 : f32 to vector<1x48xf32>
    %283 = arith.mulf %8, %282 : vector<1x48xf32>
    %284 = arith.index_cast %arg0 : i32 to index
    %c7_63 = arith.constant 7 : index
    %285 = memref.load %arg3[%284, %c7_63] : memref<2x9xf32, #tpu.memory_space<smem>>
    %286 = vector.broadcast %285 : f32 to vector<1x48xf32>
    %287 = arith.mulf %9, %286 : vector<1x48xf32>
    %288 = arith.addf %283, %287 : vector<1x48xf32>
    %289 = arith.index_cast %arg0 : i32 to index
    %c8_64 = arith.constant 8 : index
    %290 = memref.load %arg3[%289, %c8_64] : memref<2x9xf32, #tpu.memory_space<smem>>
    %291 = vector.broadcast %290 : f32 to vector<1x48xf32>
    %292 = arith.mulf %10, %291 : vector<1x48xf32>
    %293 = arith.addf %288, %292 : vector<1x48xf32>
    %294 = arith.index_cast %arg0 : i32 to index
    %c2_65 = arith.constant 2 : index
    %295 = memref.load %arg5[%294, %c2_65] : memref<2x3xf32, #tpu.memory_space<smem>>
    %296 = vector.broadcast %295 : f32 to vector<1x48xf32>
    %297 = arith.addf %293, %296 : vector<1x48xf32>
    %cst_66 = arith.constant 9.99999971E-10 : f32
    %298 = vector.broadcast %cst_66 : f32 to vector<1x48xf32>
    %299 = arith.addf %297, %298 : vector<1x48xf32>
    %cst_67 = arith.constant 1.000000e+00 : f32
    %300 = vector.broadcast %cst_67 : f32 to vector<1x48xf32>
    %301 = arith.divf %300, %299 : vector<1x48xf32>
    %302 = arith.mulf %261, %301 : vector<1x48xf32>
    %303 = arith.mulf %279, %301 : vector<1x48xf32>
    %304 = arith.index_cast %arg0 : i32 to index
    %c0_68 = arith.constant 0 : index
    %305 = memref.load %arg4[%304, %c0_68] : memref<2x9xf32, #tpu.memory_space<smem>>
    %306 = vector.broadcast %305 : f32 to vector<1x48xf32>
    %307 = arith.mulf %302, %306 : vector<1x48xf32>
    %308 = arith.index_cast %arg0 : i32 to index
    %c1_69 = arith.constant 1 : index
    %309 = memref.load %arg4[%308, %c1_69] : memref<2x9xf32, #tpu.memory_space<smem>>
    %310 = vector.broadcast %309 : f32 to vector<1x48xf32>
    %311 = arith.mulf %303, %310 : vector<1x48xf32>
    %312 = arith.addf %307, %311 : vector<1x48xf32>
    %313 = arith.index_cast %arg0 : i32 to index
    %c2_70 = arith.constant 2 : index
    %314 = memref.load %arg4[%313, %c2_70] : memref<2x9xf32, #tpu.memory_space<smem>>
    %315 = vector.broadcast %314 : f32 to vector<1x48xf32>
    %316 = arith.addf %312, %315 : vector<1x48xf32>
    %317 = arith.index_cast %arg0 : i32 to index
    %c3_71 = arith.constant 3 : index
    %318 = memref.load %arg4[%317, %c3_71] : memref<2x9xf32, #tpu.memory_space<smem>>
    %319 = vector.broadcast %318 : f32 to vector<1x48xf32>
    %320 = arith.mulf %302, %319 : vector<1x48xf32>
    %321 = arith.index_cast %arg0 : i32 to index
    %c4_72 = arith.constant 4 : index
    %322 = memref.load %arg4[%321, %c4_72] : memref<2x9xf32, #tpu.memory_space<smem>>
    %323 = vector.broadcast %322 : f32 to vector<1x48xf32>
    %324 = arith.mulf %303, %323 : vector<1x48xf32>
    %325 = arith.addf %320, %324 : vector<1x48xf32>
    %326 = arith.index_cast %arg0 : i32 to index
    %c5_73 = arith.constant 5 : index
    %327 = memref.load %arg4[%326, %c5_73] : memref<2x9xf32, #tpu.memory_space<smem>>
    %328 = vector.broadcast %327 : f32 to vector<1x48xf32>
    %329 = arith.addf %325, %328 : vector<1x48xf32>
    %cst_74 = arith.constant 3.200000e+01 : f32
    %330 = vector.broadcast %cst_74 : f32 to vector<1x48xf32>
    %331 = arith.subf %330, %329 : vector<1x48xf32>
    %cst_75 = arith.constant 1.600000e+01 : f32
    %332 = vector.broadcast %cst_75 : f32 to vector<1x48xf32>
    %333 = arith.subf %316, %332 : vector<1x48xf32>
    %cst_76 = arith.constant 2.000000e+00 : f32
    %334 = vector.broadcast %cst_76 : f32 to vector<1x48xf32>
    %335 = arith.mulf %334, %333 : vector<1x48xf32>
    %cst_77 = arith.constant 3.200000e+01 : f32
    %336 = vector.broadcast %cst_77 : f32 to vector<1x48xf32>
    %337 = arith.divf %335, %336 : vector<1x48xf32>
    %cst_78 = arith.constant 1.600000e+01 : f32
    %338 = vector.broadcast %cst_78 : f32 to vector<1x48xf32>
    %339 = arith.subf %331, %338 : vector<1x48xf32>
    %cst_79 = arith.constant 2.000000e+00 : f32
    %340 = vector.broadcast %cst_79 : f32 to vector<1x48xf32>
    %341 = arith.mulf %340, %339 : vector<1x48xf32>
    %cst_80 = arith.constant 3.200000e+01 : f32
    %342 = vector.broadcast %cst_80 : f32 to vector<1x48xf32>
    %343 = arith.divf %341, %342 : vector<1x48xf32>
    %344 = arith.subf %237, %137 : vector<1x48xf32>
    %345 = arith.subf %343, %143 : vector<1x48xf32>
    %346 = arith.mulf %344, %345 : vector<1x48xf32>
    %347 = arith.subf %243, %143 : vector<1x48xf32>
    %348 = arith.subf %337, %137 : vector<1x48xf32>
    %349 = arith.mulf %347, %348 : vector<1x48xf32>
    %350 = arith.subf %346, %349 : vector<1x48xf32>
    %351 = math.absf %350 : vector<1x48xf32>
    %cst_81 = arith.constant 9.99999996E-13 : f32
    %352 = vector.broadcast %cst_81 : f32 to vector<1x48xf32>
    %353 = arith.cmpf ogt, %351, %352 : vector<1x48xf32>
    %cst_82 = arith.constant 1.000000e-01 : f32
    %354 = vector.broadcast %cst_82 : f32 to vector<1x48xf32>
    %355 = arith.cmpf ogt, %97, %354 : vector<1x48xf32>
    %356 = arith.andi %353, %355 : vector<1x48xi1>
    %cst_83 = arith.constant 1.000000e-01 : f32
    %357 = vector.broadcast %cst_83 : f32 to vector<1x48xf32>
    %358 = arith.cmpf ogt, %197, %357 : vector<1x48xf32>
    %359 = arith.andi %356, %358 : vector<1x48xi1>
    %cst_84 = arith.constant 1.000000e-01 : f32
    %360 = vector.broadcast %cst_84 : f32 to vector<1x48xf32>
    %361 = arith.cmpf ogt, %297, %360 : vector<1x48xf32>
    %362 = arith.andi %359, %361 : vector<1x48xi1>
    %cst_85 = arith.constant 1.000000e+00 : f32
    %363 = vector.broadcast %cst_85 : f32 to vector<1x48xf32>
    %364 = arith.select %362, %350, %363 : vector<1x48xi1>, vector<1x48xf32>
    %cst_86 = arith.constant 1.000000e+00 : f32
    %365 = vector.broadcast %cst_86 : f32 to vector<1x48xf32>
    %366 = arith.divf %365, %364 : vector<1x48xf32>
    %cst_87 = arith.constant 0.000000e+00 : f32
    %367 = vector.broadcast %cst_87 : f32 to vector<1x48xf32>
    %368 = arith.select %362, %366, %367 : vector<1x48xi1>, vector<1x48xf32>
    %369 = arith.mulf %237, %343 : vector<1x48xf32>
    %370 = arith.mulf %243, %337 : vector<1x48xf32>
    %371 = arith.subf %369, %370 : vector<1x48xf32>
    %372 = arith.mulf %371, %368 : vector<1x48xf32>
    %373 = arith.subf %243, %343 : vector<1x48xf32>
    %374 = arith.mulf %373, %368 : vector<1x48xf32>
    %375 = arith.subf %337, %237 : vector<1x48xf32>
    %376 = arith.mulf %375, %368 : vector<1x48xf32>
    %377 = arith.mulf %337, %143 : vector<1x48xf32>
    %378 = arith.mulf %343, %137 : vector<1x48xf32>
    %379 = arith.subf %377, %378 : vector<1x48xf32>
    %380 = arith.mulf %379, %368 : vector<1x48xf32>
    %381 = arith.subf %343, %143 : vector<1x48xf32>
    %382 = arith.mulf %381, %368 : vector<1x48xf32>
    %383 = arith.subf %137, %337 : vector<1x48xf32>
    %384 = arith.mulf %383, %368 : vector<1x48xf32>
    %cst_88 = arith.constant 9.99999993E-9 : f32
    %385 = vector.broadcast %cst_88 : f32 to vector<1x48xf32>
    %386 = arith.maximumf %97, %385 : vector<1x48xf32>
    %cst_89 = arith.constant 1.000000e+00 : f32
    %387 = vector.broadcast %cst_89 : f32 to vector<1x48xf32>
    %388 = arith.divf %387, %386 : vector<1x48xf32>
    %cst_90 = arith.constant 9.99999993E-9 : f32
    %389 = vector.broadcast %cst_90 : f32 to vector<1x48xf32>
    %390 = arith.maximumf %197, %389 : vector<1x48xf32>
    %cst_91 = arith.constant 1.000000e+00 : f32
    %391 = vector.broadcast %cst_91 : f32 to vector<1x48xf32>
    %392 = arith.divf %391, %390 : vector<1x48xf32>
    %cst_92 = arith.constant 9.99999993E-9 : f32
    %393 = vector.broadcast %cst_92 : f32 to vector<1x48xf32>
    %394 = arith.maximumf %297, %393 : vector<1x48xf32>
    %cst_93 = arith.constant 1.000000e+00 : f32
    %395 = vector.broadcast %cst_93 : f32 to vector<1x48xf32>
    %396 = arith.divf %395, %394 : vector<1x48xf32>
    %397 = arith.subf %388, %396 : vector<1x48xf32>
    %398 = arith.subf %392, %396 : vector<1x48xf32>
    %399 = arith.mulf %372, %397 : vector<1x48xf32>
    %400 = arith.addf %396, %399 : vector<1x48xf32>
    %401 = arith.mulf %380, %398 : vector<1x48xf32>
    %402 = arith.addf %400, %401 : vector<1x48xf32>
    %403 = arith.mulf %374, %397 : vector<1x48xf32>
    %404 = arith.mulf %382, %398 : vector<1x48xf32>
    %405 = arith.addf %403, %404 : vector<1x48xf32>
    %406 = arith.mulf %376, %397 : vector<1x48xf32>
    %407 = arith.mulf %384, %398 : vector<1x48xf32>
    %408 = arith.addf %406, %407 : vector<1x48xf32>
    %cst_94 = arith.constant -1.000000e+00 : f32
    %409 = vector.broadcast %cst_94 : f32 to vector<1x48xf32>
    %410 = arith.select %362, %372, %409 : vector<1x48xi1>, vector<1x48xf32>
    %cst_95 = arith.constant 0.000000e+00 : f32
    %411 = vector.broadcast %cst_95 : f32 to vector<1x48xf32>
    %412 = arith.select %362, %374, %411 : vector<1x48xi1>, vector<1x48xf32>
    %cst_96 = arith.constant 0.000000e+00 : f32
    %413 = vector.broadcast %cst_96 : f32 to vector<1x48xf32>
    %414 = arith.select %362, %376, %413 : vector<1x48xi1>, vector<1x48xf32>
    %c0_97 = arith.constant 0 : index
    %c0_98 = arith.constant 0 : index
    %c0_99 = arith.constant 0 : index
    %415 = vector.load %arg6[%c0_97, %c0_98, %c0_99] : memref<1x10x48xf32, #tpu.memory_space<vmem>>, vector<1x1x48xf32>
    %416 = vector.shape_cast %415 : vector<1x1x48xf32> to vector<1x48xf32>
    %417 = vector.shape_cast %410 : vector<1x48xf32> to vector<1x1x48xf32>
    tpu.vector_store %arg6[%c0_97, %c0_98, %c0_99], %417 {strides = array<i32>} : memref<1x10x48xf32, #tpu.memory_space<vmem>>, vector<1x1x48xf32>,
    %c0_100 = arith.constant 0 : index
    %c1_101 = arith.constant 1 : index
    %c0_102 = arith.constant 0 : index
    %418 = vector.load %arg6[%c0_100, %c1_101, %c0_102] : memref<1x10x48xf32, #tpu.memory_space<vmem>>, vector<1x1x48xf32>
    %419 = vector.shape_cast %418 : vector<1x1x48xf32> to vector<1x48xf32>
    %420 = vector.shape_cast %412 : vector<1x48xf32> to vector<1x1x48xf32>
    tpu.vector_store %arg6[%c0_100, %c1_101, %c0_102], %420 {strides = array<i32>} : memref<1x10x48xf32, #tpu.memory_space<vmem>>, vector<1x1x48xf32>,
    %c0_103 = arith.constant 0 : index
    %c2_104 = arith.constant 2 : index
    %c0_105 = arith.constant 0 : index
    %421 = vector.load %arg6[%c0_103, %c2_104, %c0_105] : memref<1x10x48xf32, #tpu.memory_space<vmem>>, vector<1x1x48xf32>
    %422 = vector.shape_cast %421 : vector<1x1x48xf32> to vector<1x48xf32>
    %423 = vector.shape_cast %414 : vector<1x48xf32> to vector<1x1x48xf32>
    tpu.vector_store %arg6[%c0_103, %c2_104, %c0_105], %423 {strides = array<i32>} : memref<1x10x48xf32, #tpu.memory_space<vmem>>, vector<1x1x48xf32>,
    %c0_106 = arith.constant 0 : index
    %c3_107 = arith.constant 3 : index
    %c0_108 = arith.constant 0 : index
    %424 = vector.load %arg6[%c0_106, %c3_107, %c0_108] : memref<1x10x48xf32, #tpu.memory_space<vmem>>, vector<1x1x48xf32>
    %425 = vector.shape_cast %424 : vector<1x1x48xf32> to vector<1x48xf32>
    %426 = vector.shape_cast %380 : vector<1x48xf32> to vector<1x1x48xf32>
    tpu.vector_store %arg6[%c0_106, %c3_107, %c0_108], %426 {strides = array<i32>} : memref<1x10x48xf32, #tpu.memory_space<vmem>>, vector<1x1x48xf32>,
    %c0_109 = arith.constant 0 : index
    %c4_110 = arith.constant 4 : index
    %c0_111 = arith.constant 0 : index
    %427 = vector.load %arg6[%c0_109, %c4_110, %c0_111] : memref<1x10x48xf32, #tpu.memory_space<vmem>>, vector<1x1x48xf32>
    %428 = vector.shape_cast %427 : vector<1x1x48xf32> to vector<1x48xf32>
    %429 = vector.shape_cast %382 : vector<1x48xf32> to vector<1x1x48xf32>
    tpu.vector_store %arg6[%c0_109, %c4_110, %c0_111], %429 {strides = array<i32>} : memref<1x10x48xf32, #tpu.memory_space<vmem>>, vector<1x1x48xf32>,
    %c0_112 = arith.constant 0 : index
    %c5_113 = arith.constant 5 : index
    %c0_114 = arith.constant 0 : index
    %430 = vector.load %arg6[%c0_112, %c5_113, %c0_114] : memref<1x10x48xf32, #tpu.memory_space<vmem>>, vector<1x1x48xf32>
    %431 = vector.shape_cast %430 : vector<1x1x48xf32> to vector<1x48xf32>
    %432 = vector.shape_cast %384 : vector<1x48xf32> to vector<1x1x48xf32>
    tpu.vector_store %arg6[%c0_112, %c5_113, %c0_114], %432 {strides = array<i32>} : memref<1x10x48xf32, #tpu.memory_space<vmem>>, vector<1x1x48xf32>,
    %c0_115 = arith.constant 0 : index
    %c6_116 = arith.constant 6 : index
    %c0_117 = arith.constant 0 : index
    %433 = vector.load %arg6[%c0_115, %c6_116, %c0_117] : memref<1x10x48xf32, #tpu.memory_space<vmem>>, vector<1x1x48xf32>
    %434 = vector.shape_cast %433 : vector<1x1x48xf32> to vector<1x48xf32>
    %435 = vector.shape_cast %402 : vector<1x48xf32> to vector<1x1x48xf32>
    tpu.vector_store %arg6[%c0_115, %c6_116, %c0_117], %435 {strides = array<i32>} : memref<1x10x48xf32, #tpu.memory_space<vmem>>, vector<1x1x48xf32>,
    %c0_118 = arith.constant 0 : index
    %c7_119 = arith.constant 7 : index
    %c0_120 = arith.constant 0 : index
    %436 = vector.load %arg6[%c0_118, %c7_119, %c0_120] : memref<1x10x48xf32, #tpu.memory_space<vmem>>, vector<1x1x48xf32>
    %437 = vector.shape_cast %436 : vector<1x1x48xf32> to vector<1x48xf32>
    %438 = vector.shape_cast %405 : vector<1x48xf32> to vector<1x1x48xf32>
    tpu.vector_store %arg6[%c0_118, %c7_119, %c0_120], %438 {strides = array<i32>} : memref<1x10x48xf32, #tpu.memory_space<vmem>>, vector<1x1x48xf32>,
    %c0_121 = arith.constant 0 : index
    %c8_122 = arith.constant 8 : index
    %c0_123 = arith.constant 0 : index
    %439 = vector.load %arg6[%c0_121, %c8_122, %c0_123] : memref<1x10x48xf32, #tpu.memory_space<vmem>>, vector<1x1x48xf32>
    %440 = vector.shape_cast %439 : vector<1x1x48xf32> to vector<1x48xf32>
    %441 = vector.shape_cast %408 : vector<1x48xf32> to vector<1x1x48xf32>
    tpu.vector_store %arg6[%c0_121, %c8_122, %c0_123], %441 {strides = array<i32>} : memref<1x10x48xf32, #tpu.memory_space<vmem>>, vector<1x1x48xf32>,
    %c0_124 = arith.constant 0 : index
    %c9 = arith.constant 9 : index
    %c0_125 = arith.constant 0 : index
    %442 = vector.load %arg6[%c0_124, %c9, %c0_125] : memref<1x10x48xf32, #tpu.memory_space<vmem>>, vector<1x1x48xf32>
    %443 = vector.shape_cast %442 : vector<1x1x48xf32> to vector<1x48xf32>
    %444 = vector.shape_cast %43 : vector<1x48xf32> to vector<1x1x48xf32>
    tpu.vector_store %arg6[%c0_124, %c9, %c0_125], %444 {strides = array<i32>} : memref<1x10x48xf32, #tpu.memory_space<vmem>>, vector<1x1x48xf32>,
    return
  }
  func.func @transform_0(%arg0: i32) -> (i32, i32, i32) {
    %c0_i32 = arith.constant 0 : i32
    %c0_i32_0 = arith.constant 0 : i32
    %c0_i32_1 = arith.constant 0 : i32
    return %arg0, %c0_i32, %c0_i32_0 : i32, i32, i32
  }
  func.func @transform_1(%arg0: i32) -> (i32, i32, i32) {
    %c0_i32 = arith.constant 0 : i32
    %c0_i32_0 = arith.constant 0 : i32
    %c0_i32_1 = arith.constant 0 : i32
    return %arg0, %c0_i32, %c0_i32_0 : i32, i32, i32
  }
  func.func @transform_2(%arg0: i32) -> (i32, i32) {
    %c0_i32 = arith.constant 0 : i32
    %c0_i32_0 = arith.constant 0 : i32
    %c0_i32_1 = arith.constant 0 : i32
    return %c0_i32, %c0_i32_0 : i32, i32
  }
  func.func @transform_3(%arg0: i32) -> (i32, i32) {
    %c0_i32 = arith.constant 0 : i32
    %c0_i32_0 = arith.constant 0 : i32
    %c0_i32_1 = arith.constant 0 : i32
    return %c0_i32, %c0_i32_0 : i32, i32
  }
  func.func @transform_4(%arg0: i32) -> (i32, i32) {
    %c0_i32 = arith.constant 0 : i32
    %c0_i32_0 = arith.constant 0 : i32
    %c0_i32_1 = arith.constant 0 : i32
    return %c0_i32, %c0_i32_0 : i32, i32
  }
  func.func @transform_5(%arg0: i32) -> (i32, i32, i32) {
    %c0_i32 = arith.constant 0 : i32
    %c0_i32_0 = arith.constant 0 : i32
    %c0_i32_1 = arith.constant 0 : i32
    return %arg0, %c0_i32, %c0_i32_0 : i32, i32, i32
  }
}

</mosaic_0001>

<bundles_post_ra>
// kernel: tpu_custom_call.1
= control target key start
LH: loop header
LB: loop body
LE: loop exit
PB: predicated region body
PF: predicated region fallthrough
CT: control target
= control target key end

     0   :  { %10 = vsyncpa [#allocation3], 0  ;;  %s1123_s0 = inlined_call_operand.vmem [shape: f32[2,9,48], index: 0, kind: input, shape index: {}]   ;;  %s1124_s1 = inlined_call_operand.vmem [shape: f32[2,1,48], index: 1, kind: input, shape index: {}]   ;;  %s1125_s2 = inlined_call_operand.vmem [shape: f32[2,9], index: 2, kind: input, shape index: {}]   ;;  %s1126_s3 = inlined_call_operand.vmem [shape: f32[2,9], index: 3, kind: input, shape index: {}]   ;;  %s1127_s4 = inlined_call_operand.vmem [shape: f32[2,3], index: 4, kind: input, shape index: {}]   ;;  %s1128_s5 = inlined_call_operand.vmem [shape: f32[2,10,48], index: 5, kind: output, shape index: {}]  }
   0x1   :  { %11 = vsyncpa [#allocation5], 0  ;;  %s878_s18 = smov 0  }
   0x2 LB: > { %s884_s19 = sadd.s32 4294967295, %s842_s18   ;;  %p708_p0 = scmp.ge.s32.totalorder %s842_s18, 1  ;;  %s842_s18 = sphi %s878_s18, %s17_s18  }
   0x3   : > { %p163_p1 = scmp.lt.s32.totalorder %s842_s18, 3  ;;  %s187_s22 = sshll.u32 %s1126_s3, 4  ;;  %s188_s22 = int_to_ptr.vmem [resolvable:$true] %s187_s22 }
   0x4   : > { %p1129_p3 = scmp.eq.s32.totalorder %s884_s19, 0  ;;  %s176_s26 = sshll.u32 %s1125_s2, 4  ;;  %s177_s26 = int_to_ptr.vmem [resolvable:$true] %s176_s26 }
   0x5   : > { %p891_p2 = pnand %p708_p0, %p163_p1  ;;  %s198_s29 = sshll.u32 %s1127_s4, 4  ;;  %s910_s29 = int_to_ptr.vmem [resolvable:$true] %s198_s29 }
   0x6   : > { %s783_s6 = scalar_lea.vmem %s188_s22, 32  ;;  %p791_p10 = scmp.lt.s32.totalorder %s188_s22, %s188_s22 }
   0x7   : > { %s1131_s23 = scalar_select %p891_p2, 1, 0 }
   0x8   : > { %p743_p4 = pneg %p891_p2  ;;  %p784_p6 = scmp.ne.s32.totalorder %s188_s22, %s783_s6 }
   0x9   : > { %p792_p11 = scmp.lt.s32.totalorder %s783_s6, %s783_s6 }
   0xa   : > { %p906_p5 = pnand %p1129_p3, %p743_p4 }
   0xb   : > { %p793_p12 = por %p792_p11, %p791_p10 }
   0xc   : > { %p785_p7 = pneg %p906_p5 }
   0xe   : > { %p786_p8 = pnand %p785_p7, %p784_p6 }
  0x10   : > { %p787_p9 = pneg %p786_p8 }
  0x12   : > { %p794_p13 = pnand %p793_p12, %p787_p9 }
  0x14   : > { %797 = shalt.err (!%p794_p13)
}
  0x15   : > { %s844_s7 = smov [#allocation4]   ;;  %s798_s8 = scalar_lea.vmem %s177_s26, 32 }
  0x16   : > { %749 = dma.vmem_to_smem (!%p906_p5), %s188_s22, 32, %s844_s7, [#allocation5]  }
  0x17   : > { %p799_p0 = scmp.ne.s32.totalorder %s177_s26, %s798_s8  ;;  %p806_p3 = scmp.lt.s32.totalorder %s177_s26, %s177_s26 }
  0x18   : > { %p807_p2 = scmp.lt.s32.totalorder %s798_s8, %s798_s8 }
  0x19   : > { %p801_p1 = pnand %p799_p0, %p785_p7 }
  0x1a   : > { %p808_p6 = por %p807_p2, %p806_p3 }
  0x1b   : > { %p802_p4 = pneg %p801_p1 }
  0x1d   : > { %p809_p8 = pnand %p808_p6, %p802_p4 }
  0x1f   : > { %812 = shalt.err (!%p809_p8)
}
  0x20   : > { %s845_s9 = smov [#allocation2]   ;;  %s813_s10 = scalar_lea.vmem %s910_s29, 32 }
  0x21   : > { %746 = dma.vmem_to_smem (!%p906_p5), %s177_s26, 32, %s845_s9, [#allocation3]  }
  0x22   : > { %p814_p9 = scmp.ne.s32.totalorder %s910_s29, %s813_s10  ;;  %p821_p12 = scmp.lt.s32.totalorder %s910_s29, %s910_s29 }
  0x23   : > { %p822_p13 = scmp.lt.s32.totalorder %s813_s10, %s813_s10 }
  0x24   : > { %p816_p10 = pnand %p814_p9, %p785_p7 }
  0x25   : > { %p823_p2 = por %p822_p13, %p821_p12 }
  0x26   : > { %p817_p11 = pneg %p816_p10 }
  0x28   : > { %p824_p3 = pnand %p823_p2, %p817_p11 }
  0x2a   : > { %827 = shalt.err (!%p824_p3)
}
  0x2b   : > { %s846_s11 = smov [#allocation6]   ;;  %p1133_p0 = scmp.ne.s32.totalorder %s1131_s23, 0 }
  0x2c   : > { %752 = dma.vmem_to_smem (!%p906_p5), %s910_s29, 32, %s846_s11, [#allocation5]  }
  0x2d   : > { %225 = sbr.rel (%p1133_p0) target bundleno = 156 (0x9c), region = 40  ;;  %p1134_p1 = scmp.eq.s32.totalorder (!%p1133_p0), %s884_s19, 0 }
  0x34   : > { %833 = dma.done.wait (%p1134_p1), [#allocation3], 32   ;;  %p1135_p7 = pmov %p1134_p1 }
  0x35   : > { %p1136_p4 = pmov %p1134_p1 }
  0x36   : > { %835 = vsyncadd (%p1135_p7), [#allocation3], 4294967264 }
  0x37   : > { %837 = dma.done.wait (%p1136_p4), [#allocation5], 64   ;;  %p1137_p6 = pmov %p1134_p1 }
  0x39   : > { %839 = vsyncadd (%p1137_p6), [#allocation5], 4294967232 }
  0x3a   : > { %239 = sfence }
  0x3b   : > { %p265_p5 = scmp.lt.s32.totalorder %s884_s19, 1  ;;  %s946_s12 = sshll.u32 %s884_s19, 7  ;;  %vm598_vm2 = vcmask 388099   ;;  %vm602_vm9 = vcmask 391174   ;;  %vm605_vm10 = vcmask 385024  }
  0x3c   : > { %s952_s13 = sadd.s32 1, %s946_s12  ;;  %s961_s20 = sld [smem:[#allocation2 + %s946_s12]] }
  0x3d   : > { %s1141_s19 = smov (!%p265_p5, %s884_s19), 1  ;;  %s964_s21 = sld [smem:[#allocation2 + %s952_s13]] }
  0x3e   : > { %s729_s14 = sshll.u32 %s1141_s19, 4  ;;  %s967_s22 = sadd.s32 2, %s946_s12 }
  0x3f   : > { %s269_s17 = scalar_lea.vmem %s1123_s0, %s729_s14  ;;  %s369_s23 = sadd.s32 4, %s946_s12 }
  0x40   : > { %v278_v0 = vld [vmem:[%s269_s17] sm:$0xff]  ;;  %s971_s24 = sld [smem:[#allocation2 + %s967_s22]]  ;;  %s365_s25 = sadd.s32 3, %s946_s12  ;;  %v279_v4 = vld [vmem:[%s269_s17 + $0x8] sm:$0x1] }
  0x41   : > { %v284_v1 = vrot.slane %v278_v0, 2  ;;  %s976_s26 = sld [smem:[#allocation2 + %s369_s23]]  ;;  %s377_s27 = sadd.s32 5, %s946_s12  ;;  %v281_v3 = vrot.slane %v278_v0, 5 }
  0x42   : > { %s388_s28 = sadd.s32 6, %s946_s12  ;;  %s392_s29 = sadd.s32 7, %s946_s12  ;;  %v344_v7 = vstv %s961_s20 }
  0x43   : > { %v286_v2 = vsub.f32 %v278_v0, %v284_v1  ;;  %s389_s30 = sld [smem:[#allocation2 + %s388_s28]]  ;;  %s400_s7 = sadd.s32 8, %s946_s12  ;;  %v287_v6 = vsub.f32 %v279_v4, %v284_v1  ;;  %v348_v8 = vstv %s964_s21  ;;  %v283_v9 = vsub.f32 %v278_v0, %v281_v3 }
  0x44   : > { %s393_s6 = sld [smem:[#allocation2 + %s392_s29]]  ;;  %v345_v21 = vmul.f32 %v344_v7, %v278_v0  ;;  %v349_v22 = vmul.f32 %v348_v8, %v278_v0  ;;  %s1067_s28 = scalar_lea.vmem %s1128_s5, %s729_s14 }
  0x45   : > { %s984_s8 = sld [smem:[#allocation2 + %s365_s25]]  ;;  %v293_v5 = vrot.slane %v286_v2, 2  ;;  %v289_v13 = vrot.slane %v287_v6, 4  ;;  %v300_v19 = vrot.slane %v286_v2, 1  ;;  %v303_v20 = vrot.slane %v287_v6, 5 }
  0x46   : > { %s986_s9 = sld [smem:[#allocation2 + %s400_s7]]  ;;  %v356_v10 = vstv %s971_s24  ;;  %v351_v37 = vrot.slane %v349_v22, 1  ;;  %v310_v40 = vrot.slane %v286_v2, 4 }
  0x47   : > { %s990_s10 = sld [smem:[#allocation2 + %s377_s27]]  ;;  %v371_v14 = vstv %s976_s26  ;;  %v295_v17 = vmul.f32 %v293_v5, %v283_v9  ;;  %v357_v25 = vmul.f32 %v356_v10, %v278_v0  ;;  %v291_v28 = vmul.f32 %v289_v13, %v283_v9 }
  0x48   : > { %s993_s11 = sld [smem:[#allocation6 + %s967_s22]]  ;;  %v372_v27 = vmul.f32 %v371_v14, %v278_v0  ;;  %v302_v35 = vmul.f32 %v300_v19, %v283_v9  ;;  %v305_v36 = vmul.f32 %v303_v20, %v283_v9  ;;  %v312_v47 = vmul.f32 %v310_v40, %v283_v9 }
  0x49   : > { %v390_v11 = vstv %s389_s30  ;;  %v297_v32 = vrot.slane %v295_v17, 1  ;;  %s1004_s15 = sld [smem:[#allocation6 + %s946_s12]]  ;;  %v359_v48 = vrot.slane %v357_v25, 2  ;;  %v444_v49 = vmul.f32 %v356_v10, %v279_v4 }
  0x4a   : > { %v394_v12 = vstv %s393_s6  ;;  %v391_v15 = vmul.f32 %v390_v11, %v278_v0  ;;  %v374_v41 = vrot.slane %v372_v27, 1  ;;  %v307_v44 = vrot.slane %v305_v36, 6  ;;  %s1007_s16 = sld [smem:[#allocation6 + %s952_s13]] }
  0x4b   : > { %v395_v16 = vmul.f32 %v394_v12, %v278_v0  ;;  %v367_v26 = vstv %s984_s8  ;;  %v299_v46 = vsub.f32 %v291_v28, %v297_v32  ;;  %v353_v52 = vadd.f32 %v351_v37, %v345_v21  ;;  %s1017_s17 = sld [smem:[#allocation4 + %s946_s12]] }
  0x4c   : > { %v402_v18 = vstv %s986_s9  ;;  %v368_v38 = vmul.f32 %v367_v26, %v278_v0  ;;  %v309_v51 = vsub.f32 %v302_v35, %v307_v44  ;;  %v1012_v55 = vsub.f32 %v312_v47, %v297_v32  ;;  %s1022_s20 = sld [smem:[#allocation4 + %s952_s13]] }
  0x4d   : > { %v397_v23 = vrot.slane %v395_v16, 1  ;;  %v403_v24 = vmul.f32 %v402_v18, %v278_v0  ;;  %v379_v29 = vstv %s990_s10  ;;  %v456_v34 = vmul.f32 %v402_v18, %v279_v4  ;;  %s1026_s21 = sld [smem:[#allocation4 + %s365_s25]] }
  0x4e   : > { %v409_v33 = vstv %s993_s11  ;;  %v380_v42 = vmul.f32 %v379_v29, %v278_v0  ;;  %v450_v54 = vmul.f32 %v379_v29, %v279_v4  ;;  %v376_v56 = vadd.f32 %v374_v41, %v368_v38  ;;  %s1031_s24 = sld [smem:[#allocation4 + %s369_s23]]  ;;  %s272_s23 = scalar_lea.vmem %s1124_s1, %s1141_s19 }
  0x4f   : > { %v399_v30 = vadd.f32 %v397_v23, %v391_v15  ;;  %v405_v31 = vrot.slane %v403_v24, 2  ;;  %v458_v43 = vrot.slane %v456_v34, 2  ;;  %v315_v59 = vmul.f32 %v309_v51, %v309_v51  ;;  %s1036_s13 = sld [smem:[#allocation4 + %s967_s22]] }
  0x50   : > { %v382_v57 = vrot.slane %v380_v42, 2  ;;  %v314_v60 = vmul.f32 %v299_v46, %v299_v46  ;;  %v320_v61 = vmul.f32 %v1012_v55, %v1012_v55  ;;  %v446_v63 = vrot.slane %v444_v49, 2  ;;  %s1040_s25 = sld [smem:[#allocation4 + %s377_s27]] }
  0x51   : > { %v407_v39 = vadd.f32 %v405_v31, %v399_v30  ;;  %v460_v50 = vadd.f32 %v458_v43, %v399_v30  ;;  %v452_v0 = vrot.slane %v450_v54, 2  ;;  %v317_v1 = vrot.slane %v315_v59, 1 }
  0x52   : > { %v322_v2 = vrot.slane %v320_v61, 7  ;;  %v361_v3 = vadd.f32 %v359_v48, %v353_v52  ;;  %v384_v4 = vadd.f32 %v382_v57, %v376_v56  ;;  %v363_v5 = vstv %s1004_s15 }
  0x53   : > { %v1009_v45 = vadd.f32 %v409_v33, %v407_v39  ;;  %v1014_v58 = vadd.f32 %v460_v50, %v409_v33  ;;  %v386_v6 = vstv %s1007_s16  ;;  %v319_v7 = vadd.f32 %v317_v1, %v314_v60 }
  0x54   : > { %v448_v8 = vadd.f32 %v446_v63, %v353_v52  ;;  %v454_v9 = vadd.f32 %v452_v0, %v376_v56  ;;  %v364_v11 = vadd.f32 %v363_v5, %v361_v3  ;;  %v387_v12 = vadd.f32 %v386_v6, %v384_v4 }
  0x55   : > { %v411_v53 = vadd.f32 1e-09, %v1009_v45  ;;  %v462_v62 = vadd.f32 1e-09, %v1014_v58  ;;  %v324_v10 = vadd.f32 %v322_v2, %v319_v7  ;;  %v417_v14 = vstv %s1017_s17 }
  0x56   : > { %v420_v15 = vstv %s1022_s20  ;;  %v427_v16 = vstv %s1026_s21  ;;  %v430_v18 = vstv %s1031_s24  ;;  %v449_v19 = vadd.f32 %v448_v8, %v363_v5 }
  0x57   : > { %771 = vrcp.f32 %v411_v53  ;;  %v325_v13 = vadd.f32 1e-12, %v324_v10  ;;  %v455_v20 = vadd.f32 %v454_v9, %v386_v6  ;;  %v424_v28 = vstv %s1036_s13  ;;  %v721_v6 = vld [vmem:[%s272_s23] ss:$0 sm:$0xff] }
  0x58   : > { %773 = vrcp.f32 %v462_v62  ;;  %v434_v29 = vstv %s1040_s25  ;;  %vm507_vm0 = vcmp.gt.f32.partialorder %v1009_v45, 0.1  ;;  %vm513_vm1 = vcmp.gt.f32.partialorder %v1014_v58, 0.1 }
  0x59   : > { %775 = vrsqrt.f32 %v325_v13  ;;  %v847_v13 = vmov 0  }
  0x61   : > { %v772_v17 = vpop.eup %771 }
  0x62   : > { %v414_v21 = vmul.f32 %v772_v17, %v364_v11  ;;  %v415_v22 = vmul.f32 %v772_v17, %v387_v12  ;;  %v774_v23 = vpop.eup %773  ;;  %v553_v12 = vmax.f32 %v1014_v58, 1e-08 }
  0x63   : > { %v465_v30 = vmul.f32 %v774_v23, %v449_v19  ;;  %v466_v31 = vmul.f32 %v774_v23, %v455_v20  ;;  %v776_v44 = vpop.eup %775 }
  0x64   : > { %v418_v24 = vmul.f32 %v417_v14, %v414_v21  ;;  %v421_v25 = vmul.f32 %v420_v15, %v415_v22  ;;  %v428_v26 = vmul.f32 %v427_v16, %v414_v21  ;;  %v431_v27 = vmul.f32 %v430_v18, %v415_v22 }
  0x65   : > { %v467_v34 = vmul.f32 %v465_v30, %v417_v14  ;;  %v468_v35 = vmul.f32 %v466_v31, %v420_v15  ;;  %v471_v36 = vmul.f32 %v465_v30, %v427_v16  ;;  %v472_v37 = vmul.f32 %v466_v31, %v430_v18 }
  0x66   : > { %v422_v32 = vadd.f32 %v421_v25, %v418_v24  ;;  %v432_v33 = vadd.f32 %v431_v27, %v428_v26  ;;  %v328_v50 = vrot.slane %v776_v44, 1  ;;  %v508_v14 = vsel %vm507_vm0, 1, %v847_v13 }
  0x67   : > { %v469_v40 = vadd.f32 %v468_v35, %v467_v34  ;;  %v473_v41 = vadd.f32 %v472_v37, %v471_v36  ;;  %v514_v18 = vsel %vm513_vm1, 1, %v847_v13  ;;  %v509_v20 = vrot.slane %v508_v14, 5 }
  0x68   : > { %v425_v38 = vadd.f32 %v424_v28, %v422_v32  ;;  %v435_v39 = vadd.f32 %v434_v29, %v432_v33  ;;  %v330_v56 = vmul.f32 %v328_v50, %v1012_v55  ;;  %v550_v21 = vmax.f32 %v1009_v45, 1e-08 }
  0x69   : > { %v470_v46 = vadd.f32 %v469_v40, %v424_v28  ;;  %v474_v47 = vadd.f32 %v473_v41, %v434_v29  ;;  %777 = vrcp.f32 %v553_v12  ;;  %v515_v23 = vrot.slane %v514_v18, 3 }
  0x6a   : > { %v436_v42 = vsub.f32 32.0, %v435_v39  ;;  %v723_v43 = vadd.f32 -16.0, %v425_v38  ;;  %v331_v62 = vmax.f32 %v330_v56, 0.0  ;;  %vm510_vm3 = vcmp.ne.s32.totalorder %v509_v20, 0 }
  0x6b   : > { %v475_v51 = vsub.f32 32.0, %v474_v47  ;;  %v725_v52 = vadd.f32 -16.0, %v470_v46  ;;  %779 = vrcp.f32 %v550_v21  ;;  %vm516_vm5 = vcmp.ne.s32.totalorder %v515_v23, 0 }
  0x6c   : > { %v438_v48 = vmul.f32 2.0, %v723_v43  ;;  %v724_v49 = vadd.f32 -16.0, %v436_v42  ;;  %v332_v4 = vmul.f32 0.5, %v331_v62 }
  0x6d   : > { %v477_v57 = vmul.f32 2.0, %v725_v52  ;;  %v726_v59 = vadd.f32 -16.0, %v475_v51 }
  0x6e   : > { %v1048_v53 = vmul.f32 0.03125, %v438_v48  ;;  %v442_v54 = vmul.f32 2.0, %v724_v49  ;;  %v333_v8 = vadd.f32 0.5, %v332_v4 }
  0x6f   : > { %v1056_v63 = vmul.f32 0.03125, %v477_v57  ;;  %v480_v0 = vmul.f32 2.0, %v726_v59 }
  0x70   : > { %v443_v60 = vmul.f32 0.03125, %v442_v54  ;;  %v497_v61 = vrot.slane %v1048_v53, 2  ;;  %v483_v1 = vrot.slane %v1048_v53, 5  ;;  %v341_v15 = vmul.f32 %v721_v6, %v333_v8 }
  0x71   : > { %v481_v55 = vmul.f32 0.03125, %v480_v0  ;;  %v527_v28 = vrot.slane %v1056_v63, 3  ;;  %v544_v36 = vrot.slane %v1056_v63, 6 }
  0x72   : > { %v487_v2 = vrot.slane %v443_v60, 2  ;;  %v494_v3 = vrot.slane %v443_v60, 5  ;;  %v499_v5 = vsub.f32 %v1056_v63, %v497_v61  ;;  %v485_v9 = vsub.f32 %v1048_v53, %v483_v1  ;;  %610 = vst.msk [vmem:[%s1067_s28 + $0x6] sm:$0x8] %vm598_vm2, %v341_v15 }
  0x73   : > { %v778_v25 = vpop.eup %777  ;;  %v523_v27 = vrot.slane %v481_v55, 3  ;;  %v529_v32 = vmul.f32 %v527_v28, %v443_v60  ;;  %v540_v35 = vmul.f32 %v497_v61, %v481_v55  ;;  %v534_v43 = vsub.f32 %v1056_v63, %v483_v1 }
  0x74   : > { %v496_v7 = vsub.f32 %v443_v60, %v494_v3  ;;  %v1070_v10 = vsub.f32 %v481_v55, %v487_v2  ;;  %v501_v11 = vrot.slane %v499_v5, 3  ;;  %v557_v29 = vrot.slane %v778_v25, 6 }
  0x75   : > { %v780_v30 = vpop.eup %779  ;;  %v525_v31 = vmul.f32 %v523_v27, %v1048_v53  ;;  %v560_v33 = vrot.slane %v778_v25, 3  ;;  %v539_v34 = vmul.f32 %v487_v2, %v1056_v63  ;;  %v532_v38 = vsub.f32 %v443_v60, %v523_v27 }
  0x76   : > { %v491_v16 = vrot.slane %v1070_v10, 3  ;;  %v503_v17 = vmul.f32 %v501_v11, %v496_v7  ;;  %v559_v45 = vsub.f32 %v780_v30, %v557_v29  ;;  %v546_v46 = vsub.f32 %v1048_v53, %v544_v36 }
  0x77   : > { %v530_v37 = vsub.f32 %v525_v31, %v529_v32  ;;  %v562_v39 = vsub.f32 %v780_v30, %v560_v33  ;;  %v541_v44 = vsub.f32 %v539_v34, %v540_v35 }
  0x78   : > { %v493_v19 = vmul.f32 %v491_v16, %v485_v9  ;;  %v564_v41 = vrot.slane %v559_v45, 5  ;;  %v582_v59 = vrot.slane %v559_v45, 2 }
  0x79   : > { %v572_v51 = vrot.slane %v562_v39, 5  ;;  %v585_v52 = vrot.slane %v562_v39, 3 }
  0x7a   : > { %v504_v22 = vsub.f32 %v493_v19, %v503_v17 }
  0x7c   : > { %v505_v24 = vand.u32 2147483647, %v504_v22 }
  0x7e   : > { %vm506_vm4 = vcmp.gt.f32.partialorder %v505_v24, 1e-12 }
  0x7f   : > { %vm511_vm6 = vmand %vm506_vm4, %vm510_vm3 }
  0x80   : > { %vm512_vm7 = vmand %vm511_vm6, %vm507_vm0 }
  0x81   : > { %vm1081_vm8 = vmand %vm512_vm7, %vm516_vm5 }
  0x82   : > { %v518_v26 = vsel %vm1081_vm8, %v504_v22, 1.0 }
  0x83   : > { %781 = vrcp.f32 %v518_v26 }
  0x8d   : > { %v782_v40 = vpop.eup %781 }
  0x8e   : > { %v521_v42 = vsel %vm1081_vm8, %v782_v40, 0.0 }
  0x8f   : > { %v531_v47 = vmul.f32 %v530_v37, %v521_v42  ;;  %v533_v48 = vmul.f32 %v532_v38, %v521_v42  ;;  %v536_v49 = vrot.slane %v521_v42, 5  ;;  %v547_v50 = vrot.slane %v521_v42, 3 }
  0x91   : > { %v566_v54 = vmul.f32 %v564_v41, %v531_v47  ;;  %v592_v56 = vsel %vm1081_vm8, %v531_v47, -1.0  ;;  %v593_v57 = vsel %vm1081_vm8, %v533_v48, 0.0  ;;  %v538_v53 = vmul.f32 %v536_v49, %v534_v43 }
  0x92   : > { %599 = vst.msk [vmem:[%s1067_s28 - $0x3] sm:$0x8] %vm598_vm2, %v592_v56  ;;  %600 = vst.msk [vmem:[%s1067_s28 - $0x2] sm:$0x8] %vm598_vm2, %v593_v57  ;;  %v542_v60 = vmul.f32 %v541_v44, %v536_v49  ;;  %v543_v61 = vmul.f32 %v536_v49, %v1070_v10  ;;  %v549_v62 = vmul.f32 %v547_v50, %v546_v46 }
  0x93   : > { %v568_v63 = vrot.slane %v566_v54, 5  ;;  %v576_v0 = vmul.f32 %v564_v41, %v533_v48  ;;  %v595_v1 = vrot.slane %v538_v53, 3  ;;  %v584_v5 = vmul.f32 %v582_v59, %v538_v53 }
  0x94   : > { %603 = vst.msk [vmem:[%s1067_s28 - $0x3] sm:$0x40] %vm602_vm9, %v542_v60  ;;  %v577_v2 = vmul.f32 %v572_v51, %v543_v61  ;;  %604 = vst.msk [vmem:[%s1067_s28 - $0x2] sm:$0x40] %vm602_vm9, %v543_v61  ;;  %v587_v3 = vmul.f32 %v585_v52, %v549_v62  ;;  %v574_v4 = vmul.f32 %v572_v51, %v542_v60 }
  0x95   : > { %606 = vst.msk [vmem:[%s1067_s28 + $0x5] sm:$0x1] %vm605_vm10, %v549_v62  ;;  %v570_v55 = vadd.f32 %v778_v25, %v568_v63  ;;  %v597_v6 = vsel %vm1081_vm8, %v595_v1, 0.0 }
  0x96   : > { %v579_v7 = vrot.slane %v577_v2, 3  ;;  %v589_v8 = vrot.slane %v587_v3, 2  ;;  %601 = vst.msk [vmem:[%s1067_s28 - $0x1] sm:$0x8] %vm598_vm2, %v597_v6 }
  0x97   : > { %v575_v9 = vadd.f32 %v574_v4, %v570_v55 }
  0x98   : > { %v581_v10 = vadd.f32 %v579_v7, %v576_v0  ;;  %v591_v11 = vadd.f32 %v589_v8, %v584_v5 }
  0x99   : > { %607 = vst.msk [vmem:[%s1067_s28] sm:$0x40] %vm602_vm9, %v575_v9 }
  0x9a   : > { %608 = vst.msk [vmem:[%s1067_s28 + $0x4] sm:$0x8] %vm598_vm2, %v581_v10 }
  0x9b   : > { %609 = vst.msk [vmem:[%s1067_s28 + $0x2] sm:$0x40] %vm602_vm9, %v591_v11 }
  0x9c PF: > { %s17_s18 = sadd.s32 1, %s842_s18  }
  0x9d   : > { %p14_p8 = scmp.ge.s32.totalorder %s17_s18, 4  }
  0x9f   :  { %16 = sbr.rel (!%p14_p8) target bundleno = 2 (0x2), region = 86 }
  0xa6   :  { %632 = vsyncpa [#allocation3], 1 }
  0xa7   :  { %634 = vsyncpa [#allocation3 + $0x1], 1 }
  0xa8   :  { %635 = vsyncpa [#allocation5], 1 }

</bundles_post_ra>
